<compile_context>
chip_gen: v7x
topology: tpu7x:2x2x1
jax: 0.10.0
libtpu: 0.0.40
codegen_flags: <defaults>
</compile_context>

<pallas_src>
import jax
import jax.numpy as jnp
from jax import lax
from jax.experimental import pallas as pl
from jax.experimental.pallas import tpu as pltpu


def _round_up(x, mult):
    return ((x + mult - 1) // mult) * mult


def _dot_t(a, b):
    """a: (M, K), b: (N, K)  ->  (M, N), f32 accumulation (A @ B^T)."""
    return lax.dot_general(a, b, (((1,), (1,)), ((), ())),
                           preferred_element_type=jnp.float32)


def nldi_disturb_kernel(x_ref, u_ref, wx_ref, wu_ref, b1_ref,
                        w2_ref, b2_ref, wh_ref, bh_ref, p_ref):
    # Static sizes from the ref shapes.
    hidden = w2_ref.shape[0]            # 50
    q_pad = wx_ref.shape[0] - hidden    # C|D rows, padded to a multiple of 8
    wp = p_ref.shape[0]

    # Fused first matmul:  [C ; W1_x] @ x^T + [D ; W1_u] @ u^T + [0 ; b1]
    # x_ref/u_ref arrive batch-on-sublanes; the transposed-RHS contraction puts
    # the batch on lanes for everything downstream.
    z = (_dot_t(wx_ref[...], x_ref[...]) +
         _dot_t(wu_ref[...], u_ref[...]) +
         b1_ref[...])                                   # (q_pad + hidden, TB)

    cxdu = z[:q_pad, :]                                 # C x + D u (zero rows q..q_pad-1)
    h1 = jax.nn.sigmoid(z[q_pad:, :])                   # (hidden, TB)

    y = jax.nn.sigmoid(
        jnp.dot(w2_ref[...], h1, preferred_element_type=jnp.float32) + b2_ref[...])

    # Fused heads: [disturb_layer ; magnitude_layer] -> (wp + 1, TB)
    head = jnp.dot(wh_ref[...], y, preferred_element_type=jnp.float32) + bh_ref[...]
    disturb = head[:wp, :]                              # (wp, TB)
    magnitude = jnp.tanh(head[wp:wp + 1, :])            # (1, TB)

    # per-column scale = magnitude * ||Cx+Du|| / ||disturb||  (matches PyTorch,
    # including the divide-by-zero behaviour when the disturb head is zero).
    dist_sq = jnp.sum(disturb * disturb, axis=0, keepdims=True)   # (1, TB)
    max_sq = jnp.sum(cxdu * cxdu, axis=0, keepdims=True)          # (1, TB)
    scale = magnitude * jnp.sqrt(max_sq) * lax.rsqrt(dist_sq)

    p_ref[...] = disturb * scale                        # lane-dense (wp, TB) store


def nldi_disturb_forward_t(x, u, params, t=None, tb=2048):
    """Kernel-native output layout: returns p^T with shape (wp, B)."""
    del t  # unused by the module's forward
    B, n = x.shape
    Bu, m = u.shape
    assert Bu == B

    x = x.astype(jnp.float32)
    u = u.astype(jnp.float32)

    hidden = params["w2"].shape[0]
    rows = params["wx"].shape[0]          # q_pad + hidden
    wp = params["wh"].shape[0] - 1

    # Batch tile on the lane axis: multiple of 128, capped at `tb`, and chosen
    # so large batches get at least 2 grid steps (v7x: 2 TensorCores).
    tb = max(128, (tb // 128) * 128)      # keep user tb lane-aligned
    TB = min(tb, max(128, _round_up(-(-B // 2), 128)))
    grid = (pl.cdiv(B, TB),)              # partial last block; no wrapper pad

    # Advisory cost estimate (helps XLA schedule this small custom call).
    nm = n + m
    flops = 2 * B * (rows * nm + hidden * hidden + hidden * (wp + 1)) + B * (4 * wp + 8)
    transcendentals = B * (2 * hidden + 5)
    bytes_accessed = 4 * (B * (nm + wp)
                          + rows * (nm + 1)
                          + hidden * (hidden + 1)
                          + (wp + 1) * (hidden + 1))

    out = pl.pallas_call(
        nldi_disturb_kernel,
        out_shape=jax.ShapeDtypeStruct((wp, B), jnp.float32),
        grid=grid,
        in_specs=[
            pl.BlockSpec((TB, n), lambda i: (i, 0)),            # x  (batch-tiled)
            pl.BlockSpec((TB, m), lambda i: (i, 0)),            # u  (batch-tiled)
            pl.BlockSpec((rows, n), lambda i: (0, 0)),          # [C ; W1_x]
            pl.BlockSpec((rows, m), lambda i: (0, 0)),          # [D ; W1_u]
            pl.BlockSpec((rows, 1), lambda i: (0, 0)),          # [0 ; b1]
            pl.BlockSpec((hidden, hidden), lambda i: (0, 0)),   # W2
            pl.BlockSpec((hidden, 1), lambda i: (0, 0)),        # b2
            pl.BlockSpec((wp + 1, hidden), lambda i: (0, 0)),   # [Wd ; Wm]
            pl.BlockSpec((wp + 1, 1), lambda i: (0, 0)),        # [bd ; bm]
        ],
        out_specs=pl.BlockSpec((wp, TB), lambda i: (0, i)),     # lane-dense output
        compiler_params=pltpu.CompilerParams(
            dimension_semantics=("parallel",)),
        cost_estimate=pl.CostEstimate(flops=flops,
                                      transcendentals=transcendentals,
                                      bytes_accessed=bytes_accessed),
    )(x, u, params["wx"], params["wu"], params["b1p"],
      params["w2"], params["b2"], params["wh"], params["bh"])
    return out


def nldi_disturb_forward(x, u, params, t=None, tb=2048):
    """PyTorch-compatible output layout (B, wp).

    Consumers that can take the (wp, B) layout directly should call
    nldi_disturb_forward_t and skip this final transpose.
    """
    return nldi_disturb_forward_t(x, u, params, t=t, tb=tb).T


def init_params(key, n, m, wp, q, hidden=50):
    ks = jax.random.split(key, 10)
    s = 0.2
    w1 = s * jax.random.normal(ks[0], (hidden, n + m), jnp.float32)   # PyTorch (out, in)
    b1 = s * jax.random.normal(ks[1], (hidden,), jnp.float32)
    w2 = s * jax.random.normal(ks[2], (hidden, hidden), jnp.float32)
    b2 = s * jax.random.normal(ks[3], (hidden,), jnp.float32)
    wd = s * jax.random.normal(ks[4], (wp, hidden), jnp.float32)
    bd = s * jax.random.normal(ks[5], (wp,), jnp.float32)
    wm = s * jax.random.normal(ks[6], (1, hidden), jnp.float32)
    bm = s * jax.random.normal(ks[7], (1,), jnp.float32) * 10.0       # bias *= 10 (as in __init__)
    C = s * jax.random.normal(ks[8], (q, n), jnp.float32)
    D = s * jax.random.normal(ks[9], (q, m), jnp.float32)

    q_pad = _round_up(q, 8)               # sublane-aligned C|D block (zero-padded)
    pad = ((0, q_pad - q), (0, 0))
    return {
        # fused first layer + C|D, packed on the sublane (out) axis
        "wx": jnp.concatenate([jnp.pad(C, pad), w1[:, :n]], axis=0),   # (q_pad+hidden, n)
        "wu": jnp.concatenate([jnp.pad(D, pad), w1[:, n:]], axis=0),   # (q_pad+hidden, m)
        "b1p": jnp.concatenate([jnp.zeros((q_pad,), jnp.float32), b1]).reshape(-1, 1),
        "w2": w2,                                                      # (hidden, hidden)
        "b2": b2.reshape(hidden, 1),
        # fused heads [disturb ; magnitude]
        "wh": jnp.concatenate([wd, wm], axis=0),                       # (wp+1, hidden)
        "bh": jnp.concatenate([bd, bm]).reshape(wp + 1, 1),
    }


def reference_forward(x, u, p):
    # Pure-JAX reference mirroring the PyTorch forward (disturbance-is-None branch),
    # built from the same packed parameters the kernel consumes.
    hidden = p["w2"].shape[0]
    q_pad = p["wx"].shape[0] - hidden
    wp = p["wh"].shape[0] - 1
    z = x @ p["wx"].T + u @ p["wu"].T + p["b1p"].T
    cxdu = z[:, :q_pad]                         # x @ C^T + u @ D^T (zero-padded cols)
    h1 = jax.nn.sigmoid(z[:, q_pad:])
    y = jax.nn.sigmoid(h1 @ p["w2"].T + p["b2"].T)
    head = y @ p["wh"].T + p["bh"].T
    disturb = head[:, :wp]
    magnitude = jnp.tanh(head[:, wp:wp + 1])
    disturb_norm = jnp.linalg.norm(disturb, axis=1, keepdims=True)
    max_norm = jnp.linalg.norm(cxdu, axis=1, keepdims=True)
    return disturb / disturb_norm * max_norm * magnitude


if __name__ == "__main__":
    # Small shapes consistent with the module: state dim n, input dim m,
    # disturbance dim wp, C/D row dim q; hidden=50 is fixed by the module.
    n, m, wp, q = 8, 4, 6, 6

    key = jax.random.PRNGKey(0)
    kp, kx, ku, kx2, ku2 = jax.random.split(key, 5)
    params = init_params(kp, n, m, wp, q)

    # Tiny batch: single (partial) grid step.
    B = 4
    x = jax.random.normal(kx, (B, n), jnp.float32)
    u = jax.random.normal(ku, (B, m), jnp.float32)
    out = jax.block_until_ready(nldi_disturb_forward(x, u, params, t=0.0))
    ref = reference_forward(x, u, params)
    assert out.shape == (B, wp)
    assert jnp.allclose(out, ref, atol=1e-4, rtol=1e-4), (out, ref)

    # Larger batch: 2 grid steps (TB=256) with a partial last block, no padding.
    B2 = 300
    x2 = jax.random.normal(kx2, (B2, n), jnp.float32)
    u2 = jax.random.normal(ku2, (B2, m), jnp.float32)
    out2 = jax.block_until_ready(nldi_disturb_forward(x2, u2, params, t=0.0))
    ref2 = reference_forward(x2, u2, params)
    assert out2.shape == (B2, wp)
    assert jnp.allclose(out2, ref2, atol=1e-4, rtol=1e-4)

    print("KERNEL_OK")
</pallas_src>

<mosaic_0001>
module attributes {stable_mosaic.version = 11 : i64} {
  func.func @nldi_disturb_kernel(%arg0: i32, %arg1: memref<128x8xf32, #tpu.memory_space<vmem>>, %arg2: memref<128x4xf32, #tpu.memory_space<vmem>>, %arg3: memref<58x8xf32, #tpu.memory_space<vmem>>, %arg4: memref<58x4xf32, #tpu.memory_space<vmem>>, %arg5: memref<58x1xf32, #tpu.memory_space<vmem>>, %arg6: memref<50x50xf32, #tpu.memory_space<vmem>>, %arg7: memref<50x1xf32, #tpu.memory_space<vmem>>, %arg8: memref<7x50xf32, #tpu.memory_space<vmem>>, %arg9: memref<7x1xf32, #tpu.memory_space<vmem>>, %arg10: memref<6x128xf32, #tpu.memory_space<vmem>>) attributes {dimension_semantics = [#tpu.dimension_semantics<parallel>], iteration_bounds = array<i64: 1>, scalar_prefetch = 0 : i64, scratch_operands = 0 : i64, tpu.core_type = #tpu.core_type<tc>, window_params = [{transform_indices = @transform_0, window_bounds = array<i64: 128, 8>}, {transform_indices = @transform_1, window_bounds = array<i64: 128, 4>}, {pipeline_mode = #tpu.pipeline_mode<synchronous>, transform_indices = @transform_2, window_bounds = array<i64: 58, 8>}, {pipeline_mode = #tpu.pipeline_mode<synchronous>, transform_indices = @transform_3, window_bounds = array<i64: 58, 4>}, {pipeline_mode = #tpu.pipeline_mode<synchronous>, transform_indices = @transform_4, window_bounds = array<i64: 58, 1>}, {pipeline_mode = #tpu.pipeline_mode<synchronous>, transform_indices = @transform_5, window_bounds = array<i64: 50, 50>}, {pipeline_mode = #tpu.pipeline_mode<synchronous>, transform_indices = @transform_6, window_bounds = array<i64: 50, 1>}, {pipeline_mode = #tpu.pipeline_mode<synchronous>, transform_indices = @transform_7, window_bounds = array<i64: 7, 50>}, {pipeline_mode = #tpu.pipeline_mode<synchronous>, transform_indices = @transform_8, window_bounds = array<i64: 7, 1>}, {transform_indices = @transform_9, window_bounds = array<i64: 6, 128>}]} {
    %c0 = arith.constant 0 : index
    %c0_0 = arith.constant 0 : index
    %0 = vector.load %arg3[%c0, %c0_0] : memref<58x8xf32, #tpu.memory_space<vmem>>, vector<58x8xf32>
    %c0_1 = arith.constant 0 : index
    %c0_2 = arith.constant 0 : index
    %1 = vector.load %arg1[%c0_1, %c0_2] : memref<128x8xf32, #tpu.memory_space<vmem>>, vector<128x8xf32>
    %cst = arith.constant dense<0.000000e+00> : vector<58x128xf32>
    %2 = tpu.matmul %0, %1, %cst {dimension_numbers = #tpu.dot_dimension_numbers<[1], [1], [0], [0], [0, 0, 1, 0], [], []>} : vector<58x8xf32>, vector<128x8xf32>, vector<58x128xf32> -> vector<58x128xf32>
    %c0_3 = arith.constant 0 : index
    %c0_4 = arith.constant 0 : index
    %3 = vector.load %arg4[%c0_3, %c0_4] : memref<58x4xf32, #tpu.memory_space<vmem>>, vector<58x4xf32>
    %c0_5 = arith.constant 0 : index
    %c0_6 = arith.constant 0 : index
    %4 = vector.load %arg2[%c0_5, %c0_6] : memref<128x4xf32, #tpu.memory_space<vmem>>, vector<128x4xf32>
    %cst_7 = arith.constant dense<0.000000e+00> : vector<58x128xf32>
    %5 = tpu.matmul %3, %4, %cst_7 {dimension_numbers = #tpu.dot_dimension_numbers<[1], [1], [0], [0], [0, 0, 1, 0], [], []>} : vector<58x4xf32>, vector<128x4xf32>, vector<58x128xf32> -> vector<58x128xf32>
    %6 = arith.addf %2, %5 : vector<58x128xf32>
    %c0_8 = arith.constant 0 : index
    %c0_9 = arith.constant 0 : index
    %7 = vector.load %arg5[%c0_8, %c0_9] : memref<58x1xf32, #tpu.memory_space<vmem>>, vector<58x1xf32>
    %8 = vector.broadcast %7 : vector<58x1xf32> to vector<58x128xf32>
    %9 = arith.addf %6, %8 : vector<58x128xf32>
    %10 = vector.extract_strided_slice %9 {offsets = [0, 0], sizes = [8, 128], strides = [1, 1]} : vector<58x128xf32> to vector<8x128xf32>
    %11 = vector.extract_strided_slice %9 {offsets = [8, 0], sizes = [50, 128], strides = [1, 1]} : vector<58x128xf32> to vector<50x128xf32>
    %12 = arith.negf %11 : vector<50x128xf32>
    %13 = math.exp %12 : vector<50x128xf32>
    %cst_10 = arith.constant 1.000000e+00 : f32
    %14 = vector.broadcast %cst_10 : f32 to vector<50x128xf32>
    %15 = arith.addf %14, %13 : vector<50x128xf32>
    %16 = arith.divf %14, %15 : vector<50x128xf32>
    %c0_11 = arith.constant 0 : index
    %c0_12 = arith.constant 0 : index
    %17 = vector.load %arg6[%c0_11, %c0_12] : memref<50x50xf32, #tpu.memory_space<vmem>>, vector<50x50xf32>
    %cst_13 = arith.constant dense<0.000000e+00> : vector<50x128xf32>
    %18 = tpu.matmul %17, %16, %cst_13 {dimension_numbers = #tpu.dot_dimension_numbers<[1], [0], [0], [1], [0, 0, 1, 1], [], []>} : vector<50x50xf32>, vector<50x128xf32>, vector<50x128xf32> -> vector<50x128xf32>
    %c0_14 = arith.constant 0 : index
    %c0_15 = arith.constant 0 : index
    %19 = vector.load %arg7[%c0_14, %c0_15] : memref<50x1xf32, #tpu.memory_space<vmem>>, vector<50x1xf32>
    %20 = vector.broadcast %19 : vector<50x1xf32> to vector<50x128xf32>
    %21 = arith.addf %18, %20 : vector<50x128xf32>
    %22 = arith.negf %21 : vector<50x128xf32>
    %23 = math.exp %22 : vector<50x128xf32>
    %cst_16 = arith.constant 1.000000e+00 : f32
    %24 = vector.broadcast %cst_16 : f32 to vector<50x128xf32>
    %25 = arith.addf %24, %23 : vector<50x128xf32>
    %26 = arith.divf %24, %25 : vector<50x128xf32>
    %c0_17 = arith.constant 0 : index
    %c0_18 = arith.constant 0 : index
    %27 = vector.load %arg8[%c0_17, %c0_18] : memref<7x50xf32, #tpu.memory_space<vmem>>, vector<7x50xf32>
    %cst_19 = arith.constant dense<0.000000e+00> : vector<7x128xf32>
    %28 = tpu.matmul %27, %26, %cst_19 {dimension_numbers = #tpu.dot_dimension_numbers<[1], [0], [0], [1], [0, 0, 1, 1], [], []>} : vector<7x50xf32>, vector<50x128xf32>, vector<7x128xf32> -> vector<7x128xf32>
    %c0_20 = arith.constant 0 : index
    %c0_21 = arith.constant 0 : index
    %29 = vector.load %arg9[%c0_20, %c0_21] : memref<7x1xf32, #tpu.memory_space<vmem>>, vector<7x1xf32>
    %30 = vector.broadcast %29 : vector<7x1xf32> to vector<7x128xf32>
    %31 = arith.addf %28, %30 : vector<7x128xf32>
    %32 = vector.extract_strided_slice %31 {offsets = [0, 0], sizes = [6, 128], strides = [1, 1]} : vector<7x128xf32> to vector<6x128xf32>
    %33 = vector.extract_strided_slice %31 {offsets = [6, 0], sizes = [1, 128], strides = [1, 1]} : vector<7x128xf32> to vector<1x128xf32>
    %34 = math.tanh %33 : vector<1x128xf32>
    %35 = arith.mulf %32, %32 : vector<6x128xf32>
    %cst_22 = arith.constant dense<0.000000e+00> : vector<128xf32>
    %36 = vector.multi_reduction <add>, %35, %cst_22 [0] : vector<6x128xf32> to vector<128xf32>
    %37 = vector.shape_cast %36 : vector<128xf32> to vector<1x128xf32>
    %38 = arith.mulf %10, %10 : vector<8x128xf32>
    %cst_23 = arith.constant dense<0.000000e+00> : vector<128xf32>
    %39 = vector.multi_reduction <add>, %38, %cst_23 [0] : vector<8x128xf32> to vector<128xf32>
    %40 = vector.shape_cast %39 : vector<128xf32> to vector<1x128xf32>
    %41 = math.sqrt %40 : vector<1x128xf32>
    %42 = arith.mulf %34, %41 : vector<1x128xf32>
    %43 = math.rsqrt %37 : vector<1x128xf32>
    %44 = arith.mulf %42, %43 : vector<1x128xf32>
    %45 = vector.broadcast %44 : vector<1x128xf32> to vector<6x128xf32>
    %46 = arith.mulf %32, %45 : vector<6x128xf32>
    %c0_24 = arith.constant 0 : index
    %c0_25 = arith.constant 0 : index
    %47 = vector.load %arg10[%c0_24, %c0_25] : memref<6x128xf32, #tpu.memory_space<vmem>>, vector<6x128xf32>
    tpu.vector_store %arg10[%c0_24, %c0_25], %46 {strides = array<i32>} : memref<6x128xf32, #tpu.memory_space<vmem>>, vector<6x128xf32>,
    return
  }
  func.func @transform_0(%arg0: i32) -> (i32, i32) {
    %c0_i32 = arith.constant 0 : i32
    %c0_i32_0 = arith.constant 0 : i32
    return %arg0, %c0_i32 : i32, i32
  }
  func.func @transform_1(%arg0: i32) -> (i32, i32) {
    %c0_i32 = arith.constant 0 : i32
    %c0_i32_0 = arith.constant 0 : i32
    return %arg0, %c0_i32 : i32, i32
  }
  func.func @transform_2(%arg0: i32) -> (i32, i32) {
    %c0_i32 = arith.constant 0 : i32
    %c0_i32_0 = arith.constant 0 : i32
    %c0_i32_1 = arith.constant 0 : i32
    return %c0_i32, %c0_i32_0 : i32, i32
  }
  func.func @transform_3(%arg0: i32) -> (i32, i32) {
    %c0_i32 = arith.constant 0 : i32
    %c0_i32_0 = arith.constant 0 : i32
    %c0_i32_1 = arith.constant 0 : i32
    return %c0_i32, %c0_i32_0 : i32, i32
  }
  func.func @transform_4(%arg0: i32) -> (i32, i32) {
    %c0_i32 = arith.constant 0 : i32
    %c0_i32_0 = arith.constant 0 : i32
    %c0_i32_1 = arith.constant 0 : i32
    return %c0_i32, %c0_i32_0 : i32, i32
  }
  func.func @transform_5(%arg0: i32) -> (i32, i32) {
    %c0_i32 = arith.constant 0 : i32
    %c0_i32_0 = arith.constant 0 : i32
    %c0_i32_1 = arith.constant 0 : i32
    return %c0_i32, %c0_i32_0 : i32, i32
  }
  func.func @transform_6(%arg0: i32) -> (i32, i32) {
    %c0_i32 = arith.constant 0 : i32
    %c0_i32_0 = arith.constant 0 : i32
    %c0_i32_1 = arith.constant 0 : i32
    return %c0_i32, %c0_i32_0 : i32, i32
  }
  func.func @transform_7(%arg0: i32) -> (i32, i32) {
    %c0_i32 = arith.constant 0 : i32
    %c0_i32_0 = arith.constant 0 : i32
    %c0_i32_1 = arith.constant 0 : i32
    return %c0_i32, %c0_i32_0 : i32, i32
  }
  func.func @transform_8(%arg0: i32) -> (i32, i32) {
    %c0_i32 = arith.constant 0 : i32
    %c0_i32_0 = arith.constant 0 : i32
    %c0_i32_1 = arith.constant 0 : i32
    return %c0_i32, %c0_i32_0 : i32, i32
  }
  func.func @transform_9(%arg0: i32) -> (i32, i32) {
    %c0_i32 = arith.constant 0 : i32
    %c0_i32_0 = arith.constant 0 : i32
    return %c0_i32, %arg0 : i32, i32
  }
}

</mosaic_0001>

<bundles_post_ra>
// kernel: tpu_custom_call.1
= control target key start
LH: loop header
LB: loop body
LE: loop exit
PB: predicated region body
PF: predicated region fallthrough
CT: control target
= control target key end

     0   :  { %vm80_vm0 = vcmask 31744   ;;  %vm258_vm1 = vcmask 64512   ;;  %v1351_v3 = vmov 0   ;;  %vm1353_vm4 = vmmov 0   ;;  %s1758_s1 = inlined_call_operand.vmem [shape: f32[4,4], index: 1, kind: input, shape index: {}]   ;;  %s1759_s0 = inlined_call_operand.vmem [shape: f32[4,8], index: 0, kind: input, shape index: {}]   ;;  %s1760_s3 = inlined_call_operand.vmem [shape: f32[58,4], index: 3, kind: input, shape index: {}]   ;;  %s1761_s2 = inlined_call_operand.vmem [shape: f32[58,8], index: 2, kind: input, shape index: {}]   ;;  %s1762_s4 = inlined_call_operand.vmem [shape: f32[58,1], index: 4, kind: input, shape index: {}]   ;;  %s1763_s6 = inlined_call_operand.vmem [shape: f32[50,1], index: 6, kind: input, shape index: {}]   ;;  %s1764_s8 = inlined_call_operand.vmem [shape: f32[7,1], index: 8, kind: input, shape index: {}]   ;;  %s1765_s5 = inlined_call_operand.vmem [shape: f32[50,50], index: 5, kind: input, shape index: {}]   ;;  %s1766_s7 = inlined_call_operand.vmem [shape: f32[7,50], index: 7, kind: input, shape index: {}]   ;;  %s1767_s9 = inlined_call_operand.vmem [shape: f32[6,4], index: 9, kind: output, shape index: {}]  }
   0x1   :  { %v64_v0 = vld [vmem:[%s1758_s1] sm:$0xff]  ;;  %v65_v1 = vld [vmem:[%s1758_s1 + $0x8] sm:$0xff]  ;;  %vm1413_vm2 = vmpackc.low %vm80_vm0, %vm80_vm0  ;;  %1287 = vset.pattern.permute.xlu0 %v1351_v3  ;;  %1288 = vset.pattern.permute.xlu1 %v1351_v3  ;;  %vm605_vm5 = vcmask 1041408   ;;  %vm583_vm6 = vcmask 408576   ;;  %vm836_vm7 = vcmask 1045504  }
   0x2   :  { %v1153_v4 = vpack.c.bf16 %v65_v1, %v64_v0  ;;  %v40_v5 = vld [vmem:[%s1759_s0] sm:$0xff]  ;;  %v41_v6 = vld [vmem:[%s1759_s0 + $0x8] sm:$0xff]  ;;  %vm1425_vm3 = vmpackc.low %vm258_vm1, %vm258_vm1 }
   0x3   :  { %v1201_v8 = vpack.c.bf16 %v41_v6, %v40_v5  ;;  %v66_v9 = vld [vmem:[%s1758_s1 + $0x10] sm:$0xff]  ;;  %v67_v10 = vld [vmem:[%s1758_s1 + $0x18] sm:$0xff]  ;;  %v68_v15 = vld [vmem:[%s1758_s1 + $0x20] sm:$0xff] }
   0x4   :  { %v42_v11 = vld [vmem:[%s1759_s0 + $0x10] sm:$0xff]  ;;  %1155 = vmatprep.subr.msk.bf16.mxu1 %vm1413_vm2, %v1153_v4  ;;  %v1159_v12 = vpack.c.bf16 %v67_v10, %v66_v9  ;;  %v43_v13 = vld [vmem:[%s1759_s0 + $0x18] sm:$0xff]  ;;  %v69_v16 = vld [vmem:[%s1758_s1 + $0x28] sm:$0xff] }
   0x5   :  { %1203 = vmatprep.subr.msk.bf16.mxu0 %vm1425_vm3, %v1201_v8  ;;  %1158 = vmatpush3.bf16.xpose.msk.msra.mxu1 %vm1413_vm2, %v1153_v4  ;;  %v1207_v14 = vpack.c.bf16 %v43_v13, %v42_v11  ;;  %v44_v17 = vld [vmem:[%s1759_s0 + $0x20] sm:$0xff]  ;;  %v45_v18 = vld [vmem:[%s1759_s0 + $0x28] sm:$0xff]  ;;  %v1165_v19 = vpack.c.bf16 %v69_v16, %v68_v15  ;;  %v70_v23 = vld [vmem:[%s1758_s1 + $0x30] sm:$0xff] }
   0x6   :  { %1206 = vmatpush3.bf16.xpose.msk.msra.mxu0 %vm1425_vm3, %v1201_v8  ;;  %1161 = vmatprep.subr.msk.bf16.mxu1 %vm1413_vm2, %v1159_v12  ;;  %v1213_v20 = vpack.c.bf16 %v45_v18, %v44_v17  ;;  %v56_v21 = vld [vmem:[%s1760_s3] sm:$0xff]  ;;  %v71_v24 = vld [vmem:[%s1758_s1 + $0x38] sm:$0xff]  ;;  %v46_v25 = vld [vmem:[%s1759_s0 + $0x30] sm:$0xff] }
   0x7   :  { %1209 = vmatprep.subr.msk.bf16.mxu0 %vm1425_vm3, %v1207_v14  ;;  %v32_v22 = vld [vmem:[%s1761_s2] sm:$0xff]  ;;  %1045 = vmatprep.mubr.msk.f32.mxu1 %vm80_vm0, %v56_v21  ;;  %v47_v26 = vld [vmem:[%s1759_s0 + $0x38] sm:$0xff]  ;;  %v437_v27 = vld [vmem:[%s1762_s4 + $0x8] sm:$0xff]  ;;  %v1171_v28 = vpack.c.bf16 %v71_v24, %v70_v23 }
   0x8   :  { %1089 = vmatprep.mubr.msk.f32.mxu0 %vm258_vm1, %v32_v22  ;;  %451 = vperm.xlu0 %1287, %v437_v27   ;;  %v439_v29 = vld [vmem:[%s1762_s4 + $0x18] sm:$0xff]  ;;  %v1219_v30 = vpack.c.bf16 %v47_v26, %v46_v25  ;;  %v438_v31 = vld [vmem:[%s1762_s4 + $0x10] sm:$0xff]  ;;  %v440_v32 = vld [vmem:[%s1762_s4 + $0x20] sm:$0xff] }
   0x9   :  { %461 = vperm.xlu1 %1288, %v439_v29   ;;  %v72_v33 = vld [vmem:[%s1758_s1 + $0x40] sm:$0xff]  ;;  %v73_v34 = vld [vmem:[%s1758_s1 + $0x48] sm:$0xff]  ;;  %v442_v38 = vld [vmem:[%s1762_s4 + $0x30] sm:$0xff] }
   0xa   :  { %v48_v35 = vld [vmem:[%s1759_s0 + $0x40] sm:$0xff]  ;;  %v49_v36 = vld [vmem:[%s1759_s0 + $0x48] sm:$0xff]  ;;  %v1177_v39 = vpack.c.bf16 %v73_v34, %v72_v33  ;;  %v443_v41 = vld [vmem:[%s1762_s4 + $0x38] sm:$0x3] }
   0xb   :  { %v441_v37 = vld [vmem:[%s1762_s4 + $0x28] sm:$0xff]  ;;  %v1225_v40 = vpack.c.bf16 %v49_v36, %v48_v35  ;;  %v541_v42 = vld [vmem:[%s1763_s6] sm:$0xff]  ;;  %v74_v43 = vld [vmem:[%s1758_s1 + $0x50] sm:$0xff] }
   0xc   :  { %456 = vperm.xlu0 %1287, %v438_v31   ;;  %v75_v44 = vld [vmem:[%s1758_s1 + $0x58] sm:$0xff]  ;;  %v50_v45 = vld [vmem:[%s1759_s0 + $0x50] sm:$0xff]  ;;  %v542_v47 = vld [vmem:[%s1763_s6 + $0x8] sm:$0xff] }
   0xd   :  { %1164 = vmatpush3.bf16.xpose.msk.msra.mxu1 %vm1413_vm2, %v1159_v12  ;;  %466 = vperm.xlu1 %1288, %v440_v32   ;;  %v51_v46 = vld [vmem:[%s1759_s0 + $0x58] sm:$0xff]  ;;  %v543_v48 = vld [vmem:[%s1763_s6 + $0x10] sm:$0xff]  ;;  %v1183_v49 = vpack.c.bf16 %v75_v44, %v74_v43  ;;  %v545_v52 = vld [vmem:[%s1763_s6 + $0x20] sm:$0xff] }
   0xe   :  { %1212 = vmatpush3.bf16.xpose.msk.msra.mxu0 %vm1425_vm3, %v1207_v14  ;;  %1167 = vmatprep.subr.msk.bf16.mxu1 %vm1413_vm2, %v1165_v19  ;;  %v1231_v50 = vpack.c.bf16 %v51_v46, %v50_v45  ;;  %v544_v51 = vld [vmem:[%s1763_s6 + $0x18] sm:$0xff]  ;;  %v76_v53 = vld [vmem:[%s1758_s1 + $0x60] sm:$0xff]  ;;  %v77_v54 = vld [vmem:[%s1758_s1 + $0x68] sm:$0xff] }
   0xf   :  { %1215 = vmatprep.subr.msk.bf16.mxu0 %vm1425_vm3, %v1213_v20  ;;  %v52_v55 = vld [vmem:[%s1759_s0 + $0x60] sm:$0xff]  ;;  %v53_v56 = vld [vmem:[%s1759_s0 + $0x68] sm:$0xff]  ;;  %v547_v58 = vld [vmem:[%s1763_s6 + $0x30] sm:$0x3]  ;;  %v1189_v59 = vpack.c.bf16 %v77_v54, %v76_v53 }
  0x10   :  { %471 = vperm.xlu0 %1287, %v441_v37   ;;  %v546_v57 = vld [vmem:[%s1763_s6 + $0x28] sm:$0xff]  ;;  %v1237_v60 = vpack.c.bf16 %v53_v56, %v52_v55  ;;  %v436_v61 = vld [vmem:[%s1762_s4] sm:$0xff]  ;;  %v78_v63 = vld [vmem:[%s1758_s1 + $0x70] sm:$0xff] }
  0x11   :  { %476 = vperm.xlu1 %1288, %v442_v38   ;;  %v752_v62 = vld [vmem:[%s1764_s8] sm:$0x7f]  ;;  %v79_v0 = vld [vmem:[%s1758_s1 + $0x78] sm:$0xff]  ;;  %v54_v1 = vld [vmem:[%s1759_s0 + $0x70] sm:$0xff] }
  0x12   :  { %v55_v3 = vld [vmem:[%s1759_s0 + $0x78] sm:$0xff]  ;;  %v1195_v4 = vpack.c.bf16 %v79_v0, %v78_v63  ;;  %v57_v6 = vld [vmem:[%s1760_s3 + $0x8] sm:$0xff]  ;;  %v58_v9 = vld [vmem:[%s1760_s3 + $0x10] sm:$0xff] }
  0x13   :  { %v1243_v5 = vpack.c.bf16 %v55_v3, %v54_v1  ;;  %v33_v8 = vld [vmem:[%s1761_s2 + $0x8] sm:$0xff]  ;;  %v34_v2 = vld [vmem:[%s1761_s2 + $0x10] sm:$0xff]  ;;  %v59_v7 = vld [vmem:[%s1760_s3 + $0x18] sm:$0xff] }
  0x14   :  { %481 = vperm.xlu0 %1287, %v443_v41   ;;  %v35_v10 = vld [vmem:[%s1761_s2 + $0x18] sm:$0xff]  ;;  %v60_v11 = vld [vmem:[%s1760_s3 + $0x20] sm:$0xff]  ;;  %v61_v13 = vld [vmem:[%s1760_s3 + $0x28] sm:$0xff] }
  0x15   :  { %1170 = vmatpush3.bf16.xpose.msk.msra.mxu1 %vm1413_vm2, %v1165_v19  ;;  %550 = vperm.xlu1 %1288, %v541_v42   ;;  %v36_v12 = vld [vmem:[%s1761_s2 + $0x20] sm:$0xff]  ;;  %v37_v14 = vld [vmem:[%s1761_s2 + $0x28] sm:$0xff]  ;;  %v62_v15 = vld [vmem:[%s1760_s3 + $0x30] sm:$0xff]  ;;  %v1352_v19 = vmov 0.0|0.0  }
  0x16   :  { %1218 = vmatpush3.bf16.xpose.msk.msra.mxu0 %vm1425_vm3, %v1213_v20  ;;  %1173 = vmatprep.subr.msk.bf16.mxu1 %vm1413_vm2, %v1171_v28  ;;  %v38_v16 = vld [vmem:[%s1761_s2 + $0x30] sm:$0xff]  ;;  %v63_v17 = vld [vmem:[%s1760_s3 + $0x38] sm:$0x3]  ;;  %v1354_v20 = vmov 0.0  }
  0x17   :  { %1221 = vmatprep.subr.msk.bf16.mxu0 %vm1425_vm3, %v1219_v30  ;;  %v39_v18 = vld [vmem:[%s1761_s2 + $0x38] sm:$0x3] }
  0x18   :  { %555 = vperm.xlu0 %1287, %v542_v47  }
  0x19   :  { %560 = vperm.xlu1 %1288, %v543_v48  }
  0x1c   :  { %565 = vperm.xlu0 %1287, %v544_v51  }
  0x1d   :  { %1176 = vmatpush3.bf16.xpose.msk.msra.mxu1 %vm1413_vm2, %v1171_v28  ;;  %570 = vperm.xlu1 %1288, %v545_v52  }
  0x1e   :  { %1224 = vmatpush3.bf16.xpose.msk.msra.mxu0 %vm1425_vm3, %v1219_v30  ;;  %1179 = vmatprep.subr.msk.bf16.mxu1 %vm1413_vm2, %v1177_v39 }
  0x1f   :  { %1227 = vmatprep.subr.msk.bf16.mxu0 %vm1425_vm3, %v1225_v40 }
  0x20   :  { %575 = vperm.xlu0 %1287, %v546_v57  }
  0x21   :  { %580 = vperm.xlu1 %1288, %v547_v58  }
  0x24   :  { %446 = vperm.xlu0 %1287, %v436_v61  }
  0x25   :  { %1182 = vmatpush3.bf16.xpose.msk.msra.mxu1 %vm1413_vm2, %v1177_v39  ;;  %755 = vperm.xlu1 %1288, %v752_v62  }
  0x26   :  { %1230 = vmatpush3.bf16.xpose.msk.msra.mxu0 %vm1425_vm3, %v1225_v40  ;;  %1185 = vmatprep.subr.msk.bf16.mxu1 %vm1413_vm2, %v1183_v49 }
  0x27   :  { %1233 = vmatprep.subr.msk.bf16.mxu0 %vm1425_vm3, %v1231_v50 }
  0x2d   :  { %1188 = vmatpush3.bf16.xpose.msk.msra.mxu1 %vm1413_vm2, %v1183_v49 }
  0x2e   :  { %1236 = vmatpush3.bf16.xpose.msk.msra.mxu0 %vm1425_vm3, %v1231_v50  ;;  %1191 = vmatprep.subr.msk.bf16.mxu1 %vm1413_vm2, %v1189_v59 }
  0x2f   :  { %1239 = vmatprep.subr.msk.bf16.mxu0 %vm1425_vm3, %v1237_v60 }
  0x35   :  { %1194 = vmatpush3.bf16.xpose.msk.msra.mxu1 %vm1413_vm2, %v1189_v59 }
  0x36   :  { %1242 = vmatpush3.bf16.xpose.msk.msra.mxu0 %vm1425_vm3, %v1237_v60  ;;  %1197 = vmatprep.subr.msk.bf16.mxu1 %vm1413_vm2, %v1195_v4 }
  0x37   :  { %1245 = vmatprep.subr.msk.bf16.mxu0 %vm1425_vm3, %v1243_v5 }
  0x3d   :  { %1200 = vmatpush3.bf16.xpose.msk.msra.mxu1 %vm1413_vm2, %v1195_v4 }
  0x3e   :  { %1248 = vmatpush3.bf16.xpose.msk.msra.mxu0 %vm1425_vm3, %v1243_v5  ;;  %1267 = vmatprep.subr.bf16.mxu1 %v1352_v19 }
  0x3f   :  { %1249 = vmatprep.subr.bf16.mxu0 %v1352_v19 }
  0x44   :  { %1046 = vmatmul.mubr.msk.f32.vlgmr.msra.gmra.mrb[0].mxu1 %vm80_vm0, %v57_v6 }
  0x45   :  { %1090 = vmatmul.mubr.msk.f32.vlgmr.msra.gmra.mrb[0].mxu0 %vm258_vm1, %v33_v8  ;;  %1048 = vmatprep.mubr.msk.f32.mxu1 %vm80_vm0, %v58_v9 }
  0x46   :  { %1092 = vmatprep.mubr.msk.f32.mxu0 %vm258_vm1, %v34_v2 }
  0x48   :  { %1049 = vmatmul.mubr.msk.f32.gmra.mrb[2].mxu1 %vm80_vm0, %v59_v7 }
  0x49   :  { %1093 = vmatmul.mubr.msk.f32.gmra.mrb[2].mxu0 %vm258_vm1, %v35_v10  ;;  %1051 = vmatprep.mubr.msk.f32.mxu1 %vm80_vm0, %v60_v11 }
  0x4a   :  { %1095 = vmatprep.mubr.msk.f32.mxu0 %vm258_vm1, %v36_v12 }
  0x4c   :  { %1052 = vmatmul.mubr.msk.f32.gmra.mrb[4].mxu1 %vm80_vm0, %v61_v13 }
  0x4d   :  { %1096 = vmatmul.mubr.msk.f32.gmra.mrb[4].mxu0 %vm258_vm1, %v37_v14  ;;  %1054 = vmatprep.mubr.msk.f32.mxu1 %vm80_vm0, %v62_v15 }
  0x4e   :  { %1098 = vmatprep.mubr.msk.f32.mxu0 %vm258_vm1, %v38_v16 }
  0x50   :  { %1055 = vmatmul.mubr.msk.f32.gmra.mrb[6].mxu1 %vm80_vm0, %v63_v17 }
  0x51   :  { %1099 = vmatmul.mubr.msk.f32.gmra.mrb[6].mxu0 %vm258_vm1, %v39_v18  ;;  %1124 = vmatprep.mubr.msk.f32.mxu1 %vm1353_vm4, %v1354_v20 }
  0x52   :  { %1115 = vmatprep.mubr.msk.f32.mxu0 %vm1353_vm4, %v1354_v20 }
  0x87   :  { %v452_v21 = vpop.permute.xlu0 %451 }
  0x88   :  { %v462_v29 = vpop.permute.xlu1 %461 }
  0x8b   :  { %v457_v25 = vpop.permute.xlu0 %456 }
  0x8c   :  { %v467_v44 = vpop.permute.xlu1 %466 }
  0x8f   :  { %v472_v38 = vpop.permute.xlu0 %471 }
  0x90   :  { %v477_v61 = vpop.permute.xlu1 %476 }
  0x93   :  { %v482_v58 = vpop.permute.xlu0 %481 }
 0x117   :  { %v1047_v22 = vpop.f32.mrb[0].mxu1 }
 0x118   :  { %v1091_v23 = vpop.f32.mrb[0].mxu0  ;;  %v219_v24 = vpop.f32.mrb[1].mxu1 }
 0x119   :  { %v403_v26 = vadd.f32 %v1091_v23, %v1047_v22  ;;  %v397_v27 = vpop.f32.mrb[1].mxu0 }
 0x11a   :  { %v1695_v28 = vadd.f32 %v397_v27, %v219_v24  ;;  %v534_v27 = vld [vmem:[%s1765_s5] sm:$0xff] }
 0x11b   :  { %v485_v30 = vadd.f32 %v452_v21, %v403_v26  ;;  %v1050_v31 = vpop.f32.mrb[2].mxu1 }
 0x11c   :  { %v1094_v32 = vpop.f32.mrb[2].mxu0  ;;  %v229_v33 = vpop.f32.mrb[3].mxu1 }
 0x11d   :  { %v919_v34 = vmul.f32 -1.442695, %v485_v30  ;;  %v413_v35 = vadd.f32 %v1094_v32, %v1050_v31  ;;  %v407_v36 = vpop.f32.mrb[3].mxu0  ;;  %v535_v31 = vld [vmem:[%s1765_s5 + $0x8] sm:$0xff]  ;;  %v538_v32 = vld [vmem:[%s1765_s5 + $0x20] sm:$0xff] }
 0x11e   :  { %v408_v37 = vadd.f32 %v407_v36, %v229_v33  ;;  %v536_v33 = vld [vmem:[%s1765_s5 + $0x10] sm:$0xff]  ;;  %v551_v36 = vpop.permute.xlu1 %550 }
 0x11f   :  { %1289 = vpow2.f32 %v919_v34  ;;  %v487_v39 = vadd.f32 %v462_v29, %v413_v35  ;;  %v1053_v40 = vpop.f32.mrb[4].mxu1  ;;  %v537_v29 = vld [vmem:[%s1765_s5 + $0x18] sm:$0xff]  ;;  %v539_v34 = vld [vmem:[%s1765_s5 + $0x28] sm:$0xff]  ;;  %v540_v35 = vld [vmem:[%s1765_s5 + $0x30] sm:$0x3] }
 0x120   :  { %v486_v41 = vadd.f32 %v457_v25, %v408_v37  ;;  %v1097_v42 = vpop.f32.mrb[4].mxu0  ;;  %v239_v43 = vpop.f32.mrb[5].mxu1 }
 0x121   :  { %v921_v45 = vmul.f32 -1.442695, %v487_v39  ;;  %v423_v46 = vadd.f32 %v1097_v42, %v1053_v40  ;;  %v417_v47 = vpop.f32.mrb[5].mxu0  ;;  %v556_v37 = vpop.permute.xlu0 %555 }
 0x122   :  { %v920_v48 = vmul.f32 -1.442695, %v486_v41  ;;  %v418_v49 = vadd.f32 %v417_v47, %v239_v43 }
 0x123   :  { %1291 = vpow2.f32 %v921_v45  ;;  %v489_v50 = vadd.f32 %v472_v38, %v423_v46  ;;  %v1056_v51 = vpop.f32.mrb[6].mxu1  ;;  %v561_v38 = vpop.permute.xlu1 %560 }
 0x124   :  { %1293 = vpow2.f32 %v920_v48  ;;  %v488_v52 = vadd.f32 %v467_v44, %v418_v49  ;;  %v1100_v53 = vpop.f32.mrb[6].mxu0  ;;  %v249_v54 = vpop.f32.mrb[7].mxu1 }
 0x125   :  { %v923_v55 = vmul.f32 -1.442695, %v489_v50  ;;  %v433_v56 = vadd.f32 %v1100_v53, %v1056_v51  ;;  %v427_v57 = vpop.f32.mrb[7].mxu0  ;;  %v566_v39 = vpop.permute.xlu0 %565 }
 0x126   :  { %v922_v59 = vmul.f32 -1.442695, %v488_v52  ;;  %v428_v60 = vadd.f32 %v427_v57, %v249_v54 }
 0x127   :  { %v491_v62 = vadd.f32 %v482_v58, %v433_v56  ;;  %v571_v46 = vpop.permute.xlu1 %570 }
 0x128   :  { %1295 = vpow2.f32 %v922_v59  ;;  %v490_v63 = vadd.f32 %v477_v61, %v428_v60 }
 0x129   :  { %v1290_v0 = vpop.eup %1289  ;;  %1297 = vpow2.f32 %v923_v55  ;;  %v925_v3 = vmul.f32 -1.442695, %v491_v62  ;;  %v576_v55 = vpop.permute.xlu0 %575 }
 0x12a   :  { %v924_v1 = vmul.f32 -1.442695, %v490_v63  ;;  %v513_v4 = vadd.f32 1.0, %v1290_v0 }
 0x12c   :  { %1299 = vpow2.f32 %v924_v1 }
 0x12d   :  { %v1292_v5 = vpop.eup %1291  ;;  %1301 = vpow2.f32 %v925_v3  ;;  %v581_v3 = vpop.permute.xlu1 %580 }
 0x12e   :  { %v1294_v6 = vpop.eup %1293  ;;  %1303 = vrcp.f32 %v513_v4  ;;  %v515_v9 = vadd.f32 1.0, %v1292_v5 }
 0x12f   :  { %v514_v8 = vadd.f32 1.0, %v1294_v6 }
 0x131   :  { %1305 = vrcp.f32 %v514_v8 }
 0x132   :  { %v1296_v2 = vpop.eup %1295  ;;  %1307 = vrcp.f32 %v515_v9 }
 0x133   :  { %v1298_v7 = vpop.eup %1297  ;;  %v516_v10 = vadd.f32 1.0, %v1296_v2 }
 0x134   :  { %v517_v11 = vadd.f32 1.0, %v1298_v7 }
 0x135   :  { %1309 = vrcp.f32 %v516_v10 }
 0x136   :  { %v1300_v12 = vpop.eup %1299  ;;  %1311 = vrcp.f32 %v517_v11 }
 0x137   :  { %v1302_v13 = vpop.eup %1301  ;;  %v518_v14 = vadd.f32 1.0, %v1300_v12 }
 0x138   :  { %v1304_v15 = vpop.eup %1303  ;;  %v519_v18 = vadd.f32 1.0, %v1302_v13 }
 0x139   :  { %1313 = vrcp.f32 %v518_v14 }
 0x13a   :  { %1315 = vrcp.f32 %v519_v18 }
 0x13b   :  { %v1306_v16 = vpop.eup %1305 }
 0x13c   :  { %v1250_v17 = vpack.c.bf16 %v1306_v16, %v1304_v15  ;;  %v1308_v21 = vpop.eup %1307 }
 0x13e   :  { %1251 = vmatpush3.bf16.msra.mxu0 %v1250_v17  ;;  %1271 = vmatpush3.bf16.msra.mxu1 %v1250_v17 }
 0x13f   :  { %v1310_v22 = vpop.eup %1309  ;;  %1252 = vmatprep.subr.bf16.mxu0 %v1352_v19  ;;  %1268 = vmatprep.subr.bf16.mxu1 %v1352_v19 }
 0x140   :  { %v1253_v23 = vpack.c.bf16 %v1310_v22, %v1308_v21  ;;  %v1312_v24 = vpop.eup %1311 }
 0x142   :  { %1254 = vmatpush3.bf16.msra.mxu0 %v1253_v23  ;;  %1272 = vmatpush3.bf16.msra.mxu1 %v1253_v23 }
 0x143   :  { %1255 = vmatprep.subr.bf16.mxu0 %v1352_v19  ;;  %1269 = vmatprep.subr.bf16.mxu1 %v1352_v19  ;;  %v1314_v25 = vpop.eup %1313 }
 0x144   :  { %v1256_v26 = vpack.c.bf16 %v1314_v25, %v1312_v24  ;;  %v1316_v30 = vpop.eup %1315 }
 0x146   :  { %1257 = vmatpush3.bf16.msra.mxu0 %v1256_v26  ;;  %1273 = vmatpush3.bf16.msra.mxu1 %v1256_v26 }
 0x147   :  { %1113 = vmatprep.subr.mxu0 %v1354_v20  ;;  %1270 = vmatprep.subr.mxu1 %v1354_v20 }
 0x14a   :  { %1114 = vmatpush3.msk.msra.mxu0 %vm605_vm5, %v1316_v30  ;;  %1274 = vmatpush3.msk.msra.mxu1 %vm605_vm5, %v1316_v30 }
 0x14b   :  { %1116 = vmatmul.mubr.msk.f32.vlgmr.msra.gmra.mrb[8].mxu0 %vm583_vm6, %v534_v27  ;;  %1125 = vmatmul.mubr.msk.f32.vlgmr.msra.gmra.mrb[8].mxu1 %vm583_vm6, %v537_v29 }
 0x14c   :  { %1118 = vmatprep.mubr.msk.f32.mxu0 %vm1353_vm4, %v1354_v20  ;;  %1127 = vmatprep.mubr.msk.f32.mxu1 %vm1353_vm4, %v1354_v20 }
 0x14d   :  { %1258 = vmatprep.subr.bf16.mxu0 %v1352_v19 }
 0x14f   :  { %1119 = vmatmul.mubr.msk.f32.gmra.mrb[10].mxu0 %vm583_vm6, %v535_v31  ;;  %1128 = vmatmul.mubr.msk.f32.gmra.mrb[10].mxu1 %vm583_vm6, %v538_v32 }
 0x150   :  { %1121 = vmatprep.mubr.msk.f32.mxu0 %vm1353_vm4, %v1354_v20  ;;  %1130 = vmatprep.mubr.msk.f32.mxu1 %vm1353_vm4, %v1354_v20 }
 0x153   :  { %1122 = vmatmul.mubr.msk.f32.gmra.mrb[12].mxu0 %vm583_vm6, %v536_v33  ;;  %1131 = vmatmul.mubr.msk.f32.gmra.mrb[12].mxu1 %vm583_vm6, %v539_v34  ;;  %v751_v33 = vld [vmem:[%s1766_s7] sm:$0x7f] }
 0x154   :  { %1133 = vmatprep.mubr.msk.f32.mxu1 %vm1353_vm4, %v1354_v20  ;;  %1150 = vmatprep.mubr.msk.f32.mxu0 %vm1353_vm4, %v1354_v20 }
 0x157   :  { %1134 = vmatmul.mubr.msk.f32.gmra.mrb[14].mxu1 %vm583_vm6, %v540_v35  ;;  %v447_v35 = vpop.permute.xlu0 %446 }
 0x21e   :  { %v675_v40 = vpop.f32.mrb[8].mxu0  ;;  %v690_v41 = vpop.f32.mrb[8].mxu1 }
 0x21f   :  { %v676_v42 = vadd.f32 %v675_v40, %v551_v36  ;;  %v691_v43 = vadd.f32 %v690_v41, %v566_v39  ;;  %v1117_v44 = vpop.f32.mrb[9].mxu0  ;;  %v1126_v45 = vpop.f32.mrb[9].mxu1  ;;  %v484_v36 = vadd.f32 %v447_v35, %v1695_v28 }
 0x221   :  { %v934_v47 = vmul.f32 -1.442695, %v676_v42  ;;  %v937_v48 = vmul.f32 -1.442695, %v691_v43 }
 0x222   :  { %v680_v49 = vpop.f32.mrb[10].mxu0  ;;  %v695_v50 = vpop.f32.mrb[10].mxu1 }
 0x223   :  { %1317 = vpow2.f32 %v934_v47  ;;  %v681_v51 = vadd.f32 %v680_v49, %v556_v37  ;;  %v696_v52 = vadd.f32 %v695_v50, %v571_v46  ;;  %v1120_v53 = vpop.f32.mrb[11].mxu0  ;;  %v1129_v54 = vpop.f32.mrb[11].mxu1  ;;  %v844_v37 = vmul.f32 %v484_v36, %v484_v36 }
 0x224   :  { %1319 = vpow2.f32 %v937_v48 }
 0x225   :  { %v935_v56 = vmul.f32 -1.442695, %v681_v51  ;;  %v938_v57 = vmul.f32 -1.442695, %v696_v52 }
 0x226   :  { %v685_v58 = vpop.f32.mrb[12].mxu0  ;;  %v700_v59 = vpop.f32.mrb[12].mxu1 }
 0x227   :  { %1321 = vpow2.f32 %v935_v56  ;;  %v686_v60 = vadd.f32 %v685_v58, %v561_v38  ;;  %v701_v61 = vadd.f32 %v700_v59, %v576_v55  ;;  %v1123_v62 = vpop.f32.mrb[13].mxu0  ;;  %v1132_v63 = vpop.f32.mrb[13].mxu1  ;;  %v845_v38 = vrot.slane %v844_v37, 4 }
 0x228   :  { %1323 = vpow2.f32 %v938_v57 }
 0x229   :  { %v936_v0 = vmul.f32 -1.442695, %v686_v60  ;;  %v939_v1 = vmul.f32 -1.442695, %v701_v61  ;;  %v846_v39 = vadd.f32 %v845_v38, %v844_v37  ;;  %v861_v60 = vlaneseq }
 0x22a   :  { %v705_v4 = vpop.f32.mrb[14].mxu1 }
 0x22b   :  { %1325 = vpow2.f32 %v936_v0  ;;  %v706_v5 = vadd.f32 %v705_v4, %v581_v3  ;;  %v1135_v6 = vpop.f32.mrb[15].mxu1  ;;  %v847_v40 = vrot.slane %v846_v39, 2  ;;  %v862_v61 = vshrl.u32 %v861_v60, 7 }
 0x22c   :  { %1327 = vpow2.f32 %v939_v1 }
 0x22d   :  { %v1318_v8 = vpop.eup %1317  ;;  %v940_v9 = vmul.f32 -1.442695, %v706_v5  ;;  %v863_v62 = vsub.s32 6, %v862_v61 }
 0x22e   :  { %v1320_v2 = vpop.eup %1319  ;;  %v730_v7 = vadd.f32 1.0, %v1318_v8 }
 0x22f   :  { %1329 = vpow2.f32 %v940_v9  ;;  %v733_v12 = vadd.f32 1.0, %v1320_v2 }
 0x230   :  { %1331 = vrcp.f32 %v730_v7 }
 0x231   :  { %v1322_v10 = vpop.eup %1321 }
 0x232   :  { %v1324_v11 = vpop.eup %1323  ;;  %v731_v13 = vadd.f32 1.0, %v1322_v10 }
 0x233   :  { %v734_v14 = vadd.f32 1.0, %v1324_v11 }
 0x234   :  { %1333 = vrcp.f32 %v731_v13 }
 0x235   :  { %v1326_v15 = vpop.eup %1325  ;;  %1335 = vrcp.f32 %v733_v12 }
 0x236   :  { %v1328_v16 = vpop.eup %1327  ;;  %v732_v17 = vadd.f32 1.0, %v1326_v15  ;;  %1337 = vrcp.f32 %v734_v14 }
 0x237   :  { %v735_v18 = vadd.f32 1.0, %v1328_v16 }
 0x238   :  { %1339 = vrcp.f32 %v732_v17 }
 0x239   :  { %1341 = vrcp.f32 %v735_v18  ;;  %v1330_v21 = vpop.eup %1329 }
 0x23a   :  { %v1332_v22 = vpop.eup %1331  ;;  %v736_v24 = vadd.f32 1.0, %v1330_v21 }
 0x23c   :  { %1343 = vrcp.f32 %v736_v24 }
 0x23e   :  { %v1334_v23 = vpop.eup %1333 }
 0x23f   :  { %v1259_v25 = vpack.c.bf16 %v1334_v23, %v1332_v22  ;;  %v1336_v26 = vpop.eup %1335 }
 0x240   :  { %v1338_v27 = vpop.eup %1337 }
 0x241   :  { %1260 = vmatpush3.bf16.msra.mxu0 %v1259_v25 }
 0x242   :  { %v1340_v29 = vpop.eup %1339  ;;  %1261 = vmatprep.subr.bf16.mxu0 %v1352_v19 }
 0x243   :  { %v1342_v30 = vpop.eup %1341  ;;  %v1262_v31 = vpack.c.bf16 %v1336_v26, %v1340_v29 }
 0x244   :  { %v1265_v32 = vpack.c.bf16 %v1342_v30, %v1338_v27 }
 0x245   :  { %1263 = vmatpush3.bf16.msra.mxu0 %v1262_v31 }
 0x246   :  { %1264 = vmatprep.subr.bf16.mxu0 %v1352_v19  ;;  %v1344_v34 = vpop.eup %1343  ;;  %v848_v19 = vadd.f32 %v847_v40, %v846_v39 }
 0x248   :  { %v849_v41 = vrot.slane %v848_v19, 1 }
 0x249   :  { %1266 = vmatpush3.bf16.msra.mxu0 %v1265_v32 }
 0x24a   :  { %1148 = vmatprep.subr.mxu0 %v1354_v20  ;;  %v850_v42 = vadd.f32 %v849_v41, %v848_v19  ;;  %v756_v20 = vpop.permute.xlu1 %755 }
 0x24c   :  { %1345 = vrsqrt.f32 %v850_v42  ;;  %vm853_vm8 = vcmp.eq.f32.partialorder %v850_v42, inf  ;;  %v856_v53 = vand.u32 2147483648, %v850_v42  ;;  %vm855_vm9 = vcmp.eq.f32.partialorder %v850_v42, 0.0 }
 0x24d   :  { %1149 = vmatpush3.msk.msra.mxu0 %vm605_vm5, %v1344_v34 }
 0x24e   :  { %1151 = vmatmul.mubr.msk.f32.vlgmr.msra.gmra.mrb[14].mxu0 %vm583_vm6, %v751_v33 }
 0x256   :  { %v1346_v46 = vpop.eup %1345 }
 0x257   :  { %v852_v50 = vmul.f32 %v1346_v46, %v850_v42 }
 0x259   :  { %v854_v52 = vsel %vm853_vm8, %v850_v42, %v852_v50 }
 0x25a   :  { %v857_v56 = vsel %vm855_vm9, %v856_v53, %v854_v52 }
 0x321   :  { %v830_v43 = vpop.f32.mrb[14].mxu0 }
 0x322   :  { %v831_v44 = vadd.f32 %v830_v43, %v756_v20  ;;  %v1152_v45 = vpop.f32.mrb[15].mxu0 }
 0x324   :  { %1347 = vtanh.f32 %v831_v44  ;;  %v835_v47 = vmul.f32 %v831_v44, %v831_v44 }
 0x326   :  { %v837_v48 = vsel %vm836_vm7, %v835_v47, 0.0 }
 0x327   :  { %v838_v49 = vrot.slane %v837_v48, 4 }
 0x329   :  { %v839_v28 = vadd.f32 %v838_v49, %v837_v48 }
 0x32b   :  { %v840_v51 = vrot.slane %v839_v28, 2 }
 0x32d   :  { %v841_v54 = vadd.f32 %v840_v51, %v839_v28 }
 0x32e   :  { %v1348_v55 = vpop.eup %1347 }
 0x32f   :  { %v842_v57 = vrot.slane %v841_v54, 1  ;;  %v858_v58 = vmul.f32 %v1348_v55, %v857_v56 }
 0x331   :  { %v843_v59 = vadd.f32 %v842_v57, %v841_v54 }
 0x333   :  { %1349 = vrsqrt.f32 %v843_v59 }
 0x33d   :  { %v1350_v63 = vpop.eup %1349 }
 0x33e   :  { %v860_v0 = vmul.f32 %v1350_v63, %v858_v58 }
 0x340   :  { %v864_v1 = vrot.slane %v860_v0, %v863_v62 }
 0x342   :  { %v865_v3 = vmul.f32 %v864_v1, %v831_v44 }
 0x344   :  { %866 = vst [vmem:[%s1767_s9] sm:$0x3f] %v865_v3 }

</bundles_post_ra>
